<compile_context>
chip_gen: v7x
topology: tpu7x:2x2x1
jax: 0.10.0
libtpu: 0.0.40
codegen_flags: <defaults>
</compile_context>

<pallas_src>
import functools
import math

import jax
import jax.numpy as jnp
from jax.experimental import pallas as pl
from jax.experimental.pallas import tpu as pltpu


# --------------------------------------------------------------------------
# Hardware introspection helpers (host-side, trace time).
# --------------------------------------------------------------------------
def _vmem_capacity_bytes():
    try:
        cap = getattr(pltpu.get_tpu_info(), "vmem_capacity_bytes", None)
        if cap:
            return int(cap)
    except Exception:
        pass
    return 64 * 1024 * 1024        # conservative (v7x-sized) fallback


def _device_kind():
    try:
        return jax.devices()[0].device_kind.lower()
    except Exception:
        return ""


def _kv_block_spec(shape, index_map, deep_buffer):
    """kv-side BlockSpec; request 3-deep pipelining on bandwidth-poor v5e."""
    if deep_buffer:
        try:
            return pl.BlockSpec(shape, index_map, pipeline_mode=pl.Buffered(3))
        except Exception:   # older jax without pipeline_mode / Buffered
            pass
    return pl.BlockSpec(shape, index_map)


# --------------------------------------------------------------------------
# Prologue: q = Wq x + bq, k = Wk x + bk, v = Wv x + bv (1x1 convs), computed
# once per spatial position instead of once per (qi, ki) attention tile.
# --------------------------------------------------------------------------
def _qkv_projection_kernel(x_ref, wq_ref, bq_ref, wk_ref, bk_ref, wv_ref,
                           bv_ref, q_ref, k_ref, v_ref):
    # 1x1 convolution == channel-mixing matmul on the MXU (bias bcast on lanes).
    x = x_ref[0]                                                      # [C, Tp]
    q = jnp.dot(wq_ref[...], x, preferred_element_type=jnp.float32) + bq_ref[...]
    k = jnp.dot(wk_ref[...], x, preferred_element_type=jnp.float32) + bk_ref[...]
    v = jnp.dot(wv_ref[...], x, preferred_element_type=jnp.float32) + bv_ref[...]
    q_ref[0] = q.astype(q_ref.dtype)
    k_ref[0] = k.astype(k_ref.dtype)
    v_ref[0] = v.astype(v_ref.dtype)


def _project_qkv(x_flat, wq, bq2, wk, bk2, wv, bv2, *, tile, proj_dtype,
                 vmem_limit):
    B, C, n_pad = x_flat.shape
    Cq = wq.shape[0]
    itm = jnp.dtype(proj_dtype).itemsize
    cost = pl.CostEstimate(
        flops=int(2 * B * n_pad * C * (2 * Cq + C)),
        transcendentals=0,
        bytes_accessed=int(B * C * n_pad * 4
                           + B * (2 * Cq + C) * n_pad * itm
                           + (2 * Cq * C + C * C + 2 * Cq + C) * 4))
    return pl.pallas_call(
        _qkv_projection_kernel,
        out_shape=(jax.ShapeDtypeStruct((B, Cq, n_pad), proj_dtype),
                   jax.ShapeDtypeStruct((B, Cq, n_pad), proj_dtype),
                   jax.ShapeDtypeStruct((B, C, n_pad), proj_dtype)),
        grid_spec=pltpu.PrefetchScalarGridSpec(
            num_scalar_prefetch=0,
            grid=(B, n_pad // tile),
            in_specs=[
                pl.BlockSpec((1, C, tile), lambda b, i: (b, 0, i)),    # x
                pl.BlockSpec((Cq, C), lambda b, i: (0, 0)),            # wq
                pl.BlockSpec((Cq, 1), lambda b, i: (0, 0)),            # bq
                pl.BlockSpec((Cq, C), lambda b, i: (0, 0)),            # wk
                pl.BlockSpec((Cq, 1), lambda b, i: (0, 0)),            # bk
                pl.BlockSpec((C, C), lambda b, i: (0, 0)),             # wv
                pl.BlockSpec((C, 1), lambda b, i: (0, 0)),             # bv
            ],
            out_specs=(pl.BlockSpec((1, Cq, tile), lambda b, i: (b, 0, i)),
                       pl.BlockSpec((1, Cq, tile), lambda b, i: (b, 0, i)),
                       pl.BlockSpec((1, C, tile), lambda b, i: (b, 0, i))),
        ),
        compiler_params=pltpu.CompilerParams(
            dimension_semantics=("parallel", "parallel"),
            vmem_limit_bytes=vmem_limit),
        cost_estimate=cost,
    )(x_flat, wq, bq2, wk, bk2, wv, bv2)


# --------------------------------------------------------------------------
# Flash-attention kernel (online softmax over the key axis).
# --------------------------------------------------------------------------
def _flash_attention_kernel(gamma_ref, q_ref, k_ref, v_ref, x_ref, o_ref,
                            m_scr, l_scr, acc_scr,
                            *, n_valid, block_k, mask_keys, matmul_dtype,
                            exp_dtype, approx_recip):
    ki = pl.program_id(2)

    @pl.when(ki == 0)
    def _init():
        m_scr[...] = jnp.full_like(m_scr, -1e30)
        l_scr[...] = jnp.zeros_like(l_scr)
        acc_scr[...] = jnp.zeros_like(acc_scr)

    q = q_ref[0]                      # [Cq, Tq]  (precomputed, MXU dtype)
    k = k_ref[0]                      # [Cq, Tk]
    v = v_ref[0]                      # [C,  Tk]

    # s[j, i] = sum_c k[c, j] * q[c, i] == energy[i, j]  (no XLU transpose).
    s = jax.lax.dot_general(k, q, dimension_numbers=(((0,), (0,)), ((), ())),
                            preferred_element_type=jnp.float32)    # [Tk, Tq]

    if mask_keys:
        # Only kv tiles that actually contain padded keys get a non-trivial
        # mask: (Tk, 1)-shaped iota + scalar OR keeps the select a no-op
        # everywhere else and broadcasts cheaply over the Tq lanes.
        tile_has_pad = (ki + 1) * block_k > n_valid
        key_idx = ki * block_k + jax.lax.broadcasted_iota(
            jnp.int32, (block_k, 1), 0)
        kmask = jnp.logical_or(key_idx < n_valid,
                               jnp.logical_not(tile_has_pad))
        s = jnp.where(kmask, s, -1e30)

    # Online softmax over the key (sublane) axis; stats are [1, Tq] rows so
    # broadcasts against the [C, Tq] accumulator are sublane-cheap.
    m_prev = m_scr[...]                                             # [1, Tq]
    m_new = jnp.maximum(m_prev, jnp.max(s, axis=0, keepdims=True))
    alpha = jnp.exp(m_prev - m_new)                                 # [1, Tq]
    # exp on the EUP; bf16 on v6e/v7x (p feeds the MXU in bf16 anyway).
    # exp(-1e30 - m_new) underflows to exactly 0, so no second mask select.
    p = jnp.exp((s - m_new).astype(exp_dtype))                      # [Tk, Tq]
    l_scr[...] = alpha * l_scr[...] + jnp.sum(p, axis=0, keepdims=True,
                                              dtype=jnp.float32)
    m_scr[...] = m_new

    # acc[c, i] += sum_j v[c, j] * p[j, i]  -- plain matmul, no transpose.
    pv = jnp.dot(v, p.astype(matmul_dtype),
                 preferred_element_type=jnp.float32)                # [C, Tq]
    acc_scr[...] = acc_scr[...] * alpha + pv

    @pl.when(ki == pl.num_programs(2) - 1)
    def _finalize():
        inv_l = pl.reciprocal(l_scr[...], approx=approx_recip)      # [1, Tq]
        out = acc_scr[...] * inv_l
        o_ref[0] = (gamma_ref[0] * out + x_ref[0]).astype(o_ref.dtype)


# --------------------------------------------------------------------------
# Wrapper.
# --------------------------------------------------------------------------
def self_attention(x, wq, bq, wk, bk, wv, bv, gamma, *,
                   block_q=None, block_k=None, use_bf16=True,
                   exp_in_bf16=None):
    """SAGAN self-attention forward. x: [B, C, W, H] f32 -> [B, C, W, H]."""
    B, C, W, H = x.shape
    N = W * H
    Cq = wq.shape[0]

    kind = _device_kind()
    is_v5e = ("v5e" in kind) or ("v5 lite" in kind) or ("v5lite" in kind)
    vmem_cap = _vmem_capacity_bytes()
    if vmem_cap >= 100 * 1024 * 1024:          # v5e / v6e: 128 MiB physical VMEM
        default_bq, default_bk = 1024, 512
        vmem_limit = 64 * 1024 * 1024
    else:                                      # v7x: 64 MiB physical VMEM
        default_bq, default_bk = 512, 256
        vmem_limit = 48 * 1024 * 1024
    block_q = default_bq if block_q is None else block_q
    block_k = default_bk if block_k is None else block_k
    assert block_q % 128 == 0 and block_k % 128 == 0
    if exp_in_bf16 is None:
        exp_in_bf16 = not is_v5e               # v5e EUP/VPU have no bf16

    # Lane-dense spatial tiling: Tq for the query side, Tk | Tq for keys.
    n128 = pl.cdiv(N, 128) * 128
    Tq = min(block_q, n128)
    # v7x has 2 TensorCores: keep >= 2 parallel grid points when possible.
    while B * pl.cdiv(n128, Tq) < 2 and Tq > 128:
        Tq = max(128, (Tq // 2) // 128 * 128)
    Tk = min(block_k, Tq)
    if Tq % Tk != 0:
        Tk = math.gcd(Tq, Tk)                  # both multiples of 128
    n_pad = pl.cdiv(N, Tq) * Tq

    x_flat = x.reshape(B, C, N).astype(jnp.float32)
    if n_pad != N:
        x_flat = jnp.pad(x_flat, ((0, 0), (0, 0), (0, n_pad - N)))

    matmul_dtype = jnp.bfloat16 if use_bf16 else jnp.float32
    exp_dtype = jnp.bfloat16 if (use_bf16 and exp_in_bf16) else jnp.float32

    bq2 = bq.reshape(Cq, 1).astype(jnp.float32)
    bk2 = bk.reshape(Cq, 1).astype(jnp.float32)
    bv2 = bv.reshape(C, 1).astype(jnp.float32)
    gamma1 = gamma.reshape(-1)[:1].astype(jnp.float32)   # (1,) scalar -> SMEM

    # ---- prologue: projections, computed once per spatial position ----------
    q, k, v = _project_qkv(x_flat, wq.astype(jnp.float32), bq2,
                           wk.astype(jnp.float32), bk2,
                           wv.astype(jnp.float32), bv2,
                           tile=Tq, proj_dtype=matmul_dtype,
                           vmem_limit=vmem_limit)

    num_q = n_pad // Tq
    num_kv = n_pad // Tk
    grid = (B, num_q, num_kv)
    mask_keys = (n_pad != N)

    kernel = functools.partial(
        _flash_attention_kernel,
        n_valid=N, block_k=Tk, mask_keys=mask_keys,
        matmul_dtype=matmul_dtype, exp_dtype=exp_dtype,
        approx_recip=use_bf16)

    itm = jnp.dtype(matmul_dtype).itemsize
    cost = pl.CostEstimate(
        flops=int(2 * B * n_pad * n_pad * (Cq + C)),
        transcendentals=int(B * n_pad * n_pad),
        bytes_accessed=int(B * Cq * n_pad * itm                   # q (once per qi)
                           + B * num_q * (Cq + C) * n_pad * itm   # k, v re-read per qi
                           + 2 * B * C * n_pad * 4))              # x residual + output

    out_flat = pl.pallas_call(
        kernel,
        out_shape=jax.ShapeDtypeStruct((B, C, n_pad), x.dtype),
        grid_spec=pltpu.PrefetchScalarGridSpec(
            num_scalar_prefetch=1,               # gamma lands in SMEM
            grid=grid,
            in_specs=[
                pl.BlockSpec((1, Cq, Tq), lambda b, qi, ki, g: (b, 0, qi)),   # q
                _kv_block_spec((1, Cq, Tk),
                               lambda b, qi, ki, g: (b, 0, ki), is_v5e),      # k
                _kv_block_spec((1, C, Tk),
                               lambda b, qi, ki, g: (b, 0, ki), is_v5e),      # v
                pl.BlockSpec((1, C, Tq), lambda b, qi, ki, g: (b, 0, qi)),    # x (residual)
            ],
            out_specs=pl.BlockSpec((1, C, Tq), lambda b, qi, ki, g: (b, 0, qi)),
            scratch_shapes=[
                pltpu.VMEM((1, Tq), jnp.float32),   # running max m
                pltpu.VMEM((1, Tq), jnp.float32),   # running sum l
                pltpu.VMEM((C, Tq), jnp.float32),   # f32 output accumulator
            ],
        ),
        compiler_params=pltpu.CompilerParams(
            dimension_semantics=("parallel", "parallel", "arbitrary"),
            vmem_limit_bytes=vmem_limit),
        cost_estimate=cost,
    )(gamma1, q, k, v, x_flat)

    return out_flat[:, :, :N].reshape(B, C, W, H)


def self_attention_ref(x, wq, bq, wk, bk, wv, bv, gamma):
    """Pure-JAX reference mirroring the PyTorch forward."""
    B, C, W, H = x.shape
    N = W * H
    xf = x.reshape(B, C, N)
    q = jnp.einsum('oc,bcn->bon', wq, xf) + bq[None, :, None]   # [B, Cq, N]
    k = jnp.einsum('oc,bcn->bon', wk, xf) + bk[None, :, None]   # [B, Cq, N]
    v = jnp.einsum('oc,bcn->bon', wv, xf) + bv[None, :, None]   # [B, C,  N]
    energy = jnp.einsum('bci,bcj->bij', q, k)                   # [B, N, N]
    attn = jax.nn.softmax(energy, axis=-1)
    out = jnp.einsum('bcj,bij->bci', v, attn)                   # [B, C, N]
    return gamma[0] * out.reshape(B, C, W, H) + x


if __name__ == "__main__":
    # Small shapes consistent with the module: dim must be >= 8 for dim // 8.
    B, C, W, H = 2, 16, 8, 8
    Cq = C // 8

    key = jax.random.PRNGKey(0)
    kx, kwq, kbq, kwk, kbk, kwv, kbv, kx2, kx3 = jax.random.split(key, 9)

    x = jax.random.normal(kx, (B, C, W, H), dtype=jnp.float32)
    # nn.Conv2d(dim, ., 1) weights collapse to [Cout, Cin] plus bias [Cout].
    wq = jax.random.normal(kwq, (Cq, C), dtype=jnp.float32) * 0.1
    bq = jax.random.normal(kbq, (Cq,), dtype=jnp.float32) * 0.1
    wk = jax.random.normal(kwk, (Cq, C), dtype=jnp.float32) * 0.1
    bk = jax.random.normal(kbk, (Cq,), dtype=jnp.float32) * 0.1
    wv = jax.random.normal(kwv, (C, C), dtype=jnp.float32) * 0.1
    bv = jax.random.normal(kbv, (C,), dtype=jnp.float32) * 0.1
    # PyTorch inits gamma to 0 (identity residual); use nonzero so the
    # attention path actually contributes numerically.
    gamma = jnp.array([0.5], dtype=jnp.float32)

    y_ref = self_attention_ref(x, wq, bq, wk, bk, wv, bv, gamma)

    # 1) Strict f32 path (f32 MXU operands, f32 exp, exact reciprocal).
    y_f32 = self_attention(x, wq, bq, wk, bk, wv, bv, gamma, use_bf16=False)
    jax.block_until_ready(y_f32)
    assert y_f32.shape == (B, C, W, H)
    assert jnp.allclose(y_f32, y_ref, atol=1e-4, rtol=1e-4), "f32 path mismatch"

    # 2) Default fast path: bf16 MXU operands (+ bf16 exp on bf16-EUP parts),
    #    f32 softmax stats / accumulation.
    y = self_attention(x, wq, bq, wk, bk, wv, bv, gamma)
    jax.block_until_ready(y)
    assert y.shape == (B, C, W, H)
    assert jnp.allclose(y, y_ref, atol=2e-2, rtol=2e-2), "bf16 path mismatch"

    # 3) Multi-tile, decoupled Tq != Tk, padding confined to the last kv tile:
    #    N = 144 -> padded to 256 with Tq=256, Tk=128.
    x2 = jax.random.normal(kx2, (B, C, 12, 12), dtype=jnp.float32)
    y2 = self_attention(x2, wq, bq, wk, bk, wv, bv, gamma,
                        block_q=256, block_k=128, use_bf16=False)
    jax.block_until_ready(y2)
    y2_ref = self_attention_ref(x2, wq, bq, wk, bk, wv, bv, gamma)
    assert jnp.allclose(y2, y2_ref, atol=1e-4, rtol=1e-4), "tiled/masked mismatch"

    # 4) Fully padded trailing kv tile: N = 257 -> padded to 512 with Tq=256,
    #    Tk=128 (last kv tile holds no valid keys; online softmax must skip it).
    x3 = jax.random.normal(kx3, (B, C, 1, 257), dtype=jnp.float32)
    y3 = self_attention(x3, wq, bq, wk, bk, wv, bv, gamma,
                        block_q=256, block_k=128, use_bf16=False)
    jax.block_until_ready(y3)
    y3_ref = self_attention_ref(x3, wq, bq, wk, bk, wv, bv, gamma)
    assert jnp.allclose(y3, y3_ref, atol=1e-4, rtol=1e-4), "padded-tile mismatch"

    print("KERNEL_OK")
</pallas_src>

<mosaic_0001>
module attributes {stable_mosaic.version = 11 : i64} {
  func.func @_qkv_projection_kernel(%arg0: i32, %arg1: i32, %arg2: memref<1x16x128xf32, #tpu.memory_space<vmem>>, %arg3: memref<2x16xf32, #tpu.memory_space<vmem>>, %arg4: memref<2x1xf32, #tpu.memory_space<vmem>>, %arg5: memref<2x16xf32, #tpu.memory_space<vmem>>, %arg6: memref<2x1xf32, #tpu.memory_space<vmem>>, %arg7: memref<16x16xf32, #tpu.memory_space<vmem>>, %arg8: memref<16x1xf32, #tpu.memory_space<vmem>>, %arg9: memref<1x2x128xf32, #tpu.memory_space<vmem>>, %arg10: memref<1x2x128xf32, #tpu.memory_space<vmem>>, %arg11: memref<1x16x128xf32, #tpu.memory_space<vmem>>) attributes {dimension_semantics = [#tpu.dimension_semantics<parallel>, #tpu.dimension_semantics<parallel>], iteration_bounds = array<i64: 2, 1>, scalar_prefetch = 0 : i64, scratch_operands = 0 : i64, tpu.core_type = #tpu.core_type<tc>, window_params = [{transform_indices = @transform_0, window_bounds = array<i64: 1, 16, 128>}, {pipeline_mode = #tpu.pipeline_mode<synchronous>, transform_indices = @transform_1, window_bounds = array<i64: 2, 16>}, {pipeline_mode = #tpu.pipeline_mode<synchronous>, transform_indices = @transform_2, window_bounds = array<i64: 2, 1>}, {pipeline_mode = #tpu.pipeline_mode<synchronous>, transform_indices = @transform_3, window_bounds = array<i64: 2, 16>}, {pipeline_mode = #tpu.pipeline_mode<synchronous>, transform_indices = @transform_4, window_bounds = array<i64: 2, 1>}, {pipeline_mode = #tpu.pipeline_mode<synchronous>, transform_indices = @transform_5, window_bounds = array<i64: 16, 16>}, {pipeline_mode = #tpu.pipeline_mode<synchronous>, transform_indices = @transform_6, window_bounds = array<i64: 16, 1>}, {transform_indices = @transform_7, window_bounds = array<i64: 1, 2, 128>}, {transform_indices = @transform_8, window_bounds = array<i64: 1, 2, 128>}, {transform_indices = @transform_9, window_bounds = array<i64: 1, 16, 128>}]} {
    %c0 = arith.constant 0 : index
    %c0_0 = arith.constant 0 : index
    %c0_1 = arith.constant 0 : index
    %0 = vector.load %arg2[%c0, %c0_0, %c0_1] : memref<1x16x128xf32, #tpu.memory_space<vmem>>, vector<1x16x128xf32>
    %1 = vector.shape_cast %0 : vector<1x16x128xf32> to vector<16x128xf32>
    %c0_2 = arith.constant 0 : index
    %c0_3 = arith.constant 0 : index
    %2 = vector.load %arg3[%c0_2, %c0_3] : memref<2x16xf32, #tpu.memory_space<vmem>>, vector<2x16xf32>
    %cst = arith.constant dense<0.000000e+00> : vector<2x128xf32>
    %3 = tpu.matmul %2, %1, %cst {dimension_numbers = #tpu.dot_dimension_numbers<[1], [0], [0], [1], [0, 0, 1, 1], [], []>} : vector<2x16xf32>, vector<16x128xf32>, vector<2x128xf32> -> vector<2x128xf32>
    %c0_4 = arith.constant 0 : index
    %c0_5 = arith.constant 0 : index
    %4 = vector.load %arg4[%c0_4, %c0_5] : memref<2x1xf32, #tpu.memory_space<vmem>>, vector<2x1xf32>
    %5 = vector.broadcast %4 : vector<2x1xf32> to vector<2x128xf32>
    %6 = arith.addf %3, %5 : vector<2x128xf32>
    %c0_6 = arith.constant 0 : index
    %c0_7 = arith.constant 0 : index
    %7 = vector.load %arg5[%c0_6, %c0_7] : memref<2x16xf32, #tpu.memory_space<vmem>>, vector<2x16xf32>
    %cst_8 = arith.constant dense<0.000000e+00> : vector<2x128xf32>
    %8 = tpu.matmul %7, %1, %cst_8 {dimension_numbers = #tpu.dot_dimension_numbers<[1], [0], [0], [1], [0, 0, 1, 1], [], []>} : vector<2x16xf32>, vector<16x128xf32>, vector<2x128xf32> -> vector<2x128xf32>
    %c0_9 = arith.constant 0 : index
    %c0_10 = arith.constant 0 : index
    %9 = vector.load %arg6[%c0_9, %c0_10] : memref<2x1xf32, #tpu.memory_space<vmem>>, vector<2x1xf32>
    %10 = vector.broadcast %9 : vector<2x1xf32> to vector<2x128xf32>
    %11 = arith.addf %8, %10 : vector<2x128xf32>
    %c0_11 = arith.constant 0 : index
    %c0_12 = arith.constant 0 : index
    %12 = vector.load %arg7[%c0_11, %c0_12] : memref<16x16xf32, #tpu.memory_space<vmem>>, vector<16x16xf32>
    %cst_13 = arith.constant dense<0.000000e+00> : vector<16x128xf32>
    %13 = tpu.matmul %12, %1, %cst_13 {dimension_numbers = #tpu.dot_dimension_numbers<[1], [0], [0], [1], [0, 0, 1, 1], [], []>} : vector<16x16xf32>, vector<16x128xf32>, vector<16x128xf32> -> vector<16x128xf32>
    %c0_14 = arith.constant 0 : index
    %c0_15 = arith.constant 0 : index
    %14 = vector.load %arg8[%c0_14, %c0_15] : memref<16x1xf32, #tpu.memory_space<vmem>>, vector<16x1xf32>
    %15 = vector.broadcast %14 : vector<16x1xf32> to vector<16x128xf32>
    %16 = arith.addf %13, %15 : vector<16x128xf32>
    %c0_16 = arith.constant 0 : index
    %c0_17 = arith.constant 0 : index
    %c0_18 = arith.constant 0 : index
    %17 = vector.load %arg9[%c0_16, %c0_17, %c0_18] : memref<1x2x128xf32, #tpu.memory_space<vmem>>, vector<1x2x128xf32>
    %18 = vector.shape_cast %17 : vector<1x2x128xf32> to vector<2x128xf32>
    %19 = vector.shape_cast %6 : vector<2x128xf32> to vector<1x2x128xf32>
    tpu.vector_store %arg9[%c0_16, %c0_17, %c0_18], %19 {strides = array<i32>} : memref<1x2x128xf32, #tpu.memory_space<vmem>>, vector<1x2x128xf32>,
    %c0_19 = arith.constant 0 : index
    %c0_20 = arith.constant 0 : index
    %c0_21 = arith.constant 0 : index
    %20 = vector.load %arg10[%c0_19, %c0_20, %c0_21] : memref<1x2x128xf32, #tpu.memory_space<vmem>>, vector<1x2x128xf32>
    %21 = vector.shape_cast %20 : vector<1x2x128xf32> to vector<2x128xf32>
    %22 = vector.shape_cast %11 : vector<2x128xf32> to vector<1x2x128xf32>
    tpu.vector_store %arg10[%c0_19, %c0_20, %c0_21], %22 {strides = array<i32>} : memref<1x2x128xf32, #tpu.memory_space<vmem>>, vector<1x2x128xf32>,
    %c0_22 = arith.constant 0 : index
    %c0_23 = arith.constant 0 : index
    %c0_24 = arith.constant 0 : index
    %23 = vector.load %arg11[%c0_22, %c0_23, %c0_24] : memref<1x16x128xf32, #tpu.memory_space<vmem>>, vector<1x16x128xf32>
    %24 = vector.shape_cast %23 : vector<1x16x128xf32> to vector<16x128xf32>
    %25 = vector.shape_cast %16 : vector<16x128xf32> to vector<1x16x128xf32>
    tpu.vector_store %arg11[%c0_22, %c0_23, %c0_24], %25 {strides = array<i32>} : memref<1x16x128xf32, #tpu.memory_space<vmem>>, vector<1x16x128xf32>,
    return
  }
  func.func @transform_0(%arg0: i32, %arg1: i32) -> (i32, i32, i32) {
    %c0_i32 = arith.constant 0 : i32
    %c0_i32_0 = arith.constant 0 : i32
    return %arg0, %c0_i32, %arg1 : i32, i32, i32
  }
  func.func @transform_1(%arg0: i32, %arg1: i32) -> (i32, i32) {
    %c0_i32 = arith.constant 0 : i32
    %c0_i32_0 = arith.constant 0 : i32
    %c0_i32_1 = arith.constant 0 : i32
    return %c0_i32, %c0_i32_0 : i32, i32
  }
  func.func @transform_2(%arg0: i32, %arg1: i32) -> (i32, i32) {
    %c0_i32 = arith.constant 0 : i32
    %c0_i32_0 = arith.constant 0 : i32
    %c0_i32_1 = arith.constant 0 : i32
    return %c0_i32, %c0_i32_0 : i32, i32
  }
  func.func @transform_3(%arg0: i32, %arg1: i32) -> (i32, i32) {
    %c0_i32 = arith.constant 0 : i32
    %c0_i32_0 = arith.constant 0 : i32
    %c0_i32_1 = arith.constant 0 : i32
    return %c0_i32, %c0_i32_0 : i32, i32
  }
  func.func @transform_4(%arg0: i32, %arg1: i32) -> (i32, i32) {
    %c0_i32 = arith.constant 0 : i32
    %c0_i32_0 = arith.constant 0 : i32
    %c0_i32_1 = arith.constant 0 : i32
    return %c0_i32, %c0_i32_0 : i32, i32
  }
  func.func @transform_5(%arg0: i32, %arg1: i32) -> (i32, i32) {
    %c0_i32 = arith.constant 0 : i32
    %c0_i32_0 = arith.constant 0 : i32
    %c0_i32_1 = arith.constant 0 : i32
    return %c0_i32, %c0_i32_0 : i32, i32
  }
  func.func @transform_6(%arg0: i32, %arg1: i32) -> (i32, i32) {
    %c0_i32 = arith.constant 0 : i32
    %c0_i32_0 = arith.constant 0 : i32
    %c0_i32_1 = arith.constant 0 : i32
    return %c0_i32, %c0_i32_0 : i32, i32
  }
  func.func @transform_7(%arg0: i32, %arg1: i32) -> (i32, i32, i32) {
    %c0_i32 = arith.constant 0 : i32
    %c0_i32_0 = arith.constant 0 : i32
    return %arg0, %c0_i32, %arg1 : i32, i32, i32
  }
  func.func @transform_8(%arg0: i32, %arg1: i32) -> (i32, i32, i32) {
    %c0_i32 = arith.constant 0 : i32
    %c0_i32_0 = arith.constant 0 : i32
    return %arg0, %c0_i32, %arg1 : i32, i32, i32
  }
  func.func @transform_9(%arg0: i32, %arg1: i32) -> (i32, i32, i32) {
    %c0_i32 = arith.constant 0 : i32
    %c0_i32_0 = arith.constant 0 : i32
    return %arg0, %c0_i32, %arg1 : i32, i32, i32
  }
}

</mosaic_0001>

<bundles_post_ra>
// kernel: tpu_custom_call.1
= control target key start
LH: loop header
LB: loop body
LE: loop exit
PB: predicated region body
PF: predicated region fallthrough
CT: control target
= control target key end

     0   :  { %s1519_s0 = inlined_call_operand.hbm [shape: f32[2,16,128], index: 0, kind: input, shape index: {}]   ;;  %s1520_s1 = inlined_call_operand.vmem [shape: f32[2,16], index: 1, kind: input, shape index: {}]   ;;  %s1521_s2 = inlined_call_operand.vmem [shape: f32[2,1], index: 2, kind: input, shape index: {}]   ;;  %s1522_s3 = inlined_call_operand.vmem [shape: f32[2,16], index: 3, kind: input, shape index: {}]   ;;  %s1523_s4 = inlined_call_operand.vmem [shape: f32[2,1], index: 4, kind: input, shape index: {}]   ;;  %s1524_s5 = inlined_call_operand.vmem [shape: f32[16,16], index: 5, kind: input, shape index: {}]   ;;  %s1525_s6 = inlined_call_operand.vmem [shape: f32[16,1], index: 6, kind: input, shape index: {}]   ;;  %s1526_s7 = inlined_call_operand.hbm [shape: f32[2,2,128], index: 7, kind: output, shape index: {0}]   ;;  %s1527_s8 = inlined_call_operand.hbm [shape: f32[2,2,128], index: 8, kind: output, shape index: {1}]   ;;  %s1528_s9 = inlined_call_operand.hbm [shape: f32[2,16,128], index: 9, kind: output, shape index: {2}]  }
   0x1   :  { %1533 = sst [smem:[#allocation14_spill]] %s1519_s0 }
   0x2   :  { %1534 = sst [smem:[#allocation15_spill]] %s1520_s1 }
   0x3   :  { %1535 = sst [smem:[#allocation16_spill]] %s1521_s2 }
   0x4   :  { %1536 = sst [smem:[#allocation17_spill]] %s1522_s3 }
   0x5   :  { %15 = vsyncpa [#allocation3], 0 }
   0x6   :  { %17 = vsyncpa [#allocation3 + $0x1], 0 }
   0x7   :  { %18 = vsyncpa [#allocation4], 0 }
   0x8   :  { %20 = vsyncpa [#allocation4 + $0x1], 0 }
   0x9   :  { %21 = vsyncpa [#allocation7], 0 }
   0xa   :  { %23 = vsyncpa [#allocation7 + $0x1], 0  ;;  %s1239_s30 = smov 0   ;;  %s1241_s10 = smov 0  }
   0xb   :  { %s1243_s11 = smov 0   ;;  %s1245_s12 = smov 0  }
   0xc   :  { %s1247_s13 = smov 0   ;;  %s1249_s14 = smov 0  }
   0xd LB: > { %1537 = sst [smem:[#allocation12_spill]] %s1171_s13  ;;  %s1270_s15 = sadd.s32 4294967295, %s1175_s14   ;;  %s1175_s14 = sphi %s1249_s14, %s29_s14   ;;  %s1171_s13 = sphi %s1247_s13, %s1554_s13   ;;  %s1167_s12 = sphi %s1245_s12, %s1553_s12   ;;  %s1163_s11 = sphi %s1243_s11, %s1557_s11   ;;  %s1159_s10 = sphi %s1241_s10, %s1556_s10   ;;  %s1155_s30 = sphi %s1239_s30, %s1555_s30  }
   0xe   : > { %s1529_s16 = sadd.s32 4294967294, %s1175_s14   ;;  %s41_s17 = sadd.s32 1, %s1171_s13 }
   0xf   : > { %s50_s18 = sadd.s32 1, %s1163_s11  ;;  %p43_p0 = scmp.ge.s32.totalorder %s41_s17, 2 }
  0x10   : > { %p57_p1 = scmp.ne.s32.totalorder %s1163_s11, %s1159_s10  ;;  %p58_p2 = scmp.eq.s32.totalorder %s1175_s14, 0 }
  0x11   : > { %p63_p3 = scmp.ne.s32.totalorder %s1159_s10, %s1155_s30  ;;  %s1559_s17 = smov (%p43_p0, %s41_s17), 0 }
  0x12   : > { %1538 = sst [smem:[#allocation13_spill]] %s1559_s17  ;;  %p1282_p4 = por %p58_p2, %p57_p1 }
  0x13   : > { %p64_p5 = scmp.eq.s32.totalorder %s1270_s15, 0  ;;  %s45_s20 = ssub.s32 %s1171_s13, %s1559_s17 }
  0x14   : > { %p215_p6 = scmp.eq.s32.totalorder %s1270_s15, 1  ;;  %p48_p7 = scmp.eq.s32.totalorder %s45_s20, 0 }
  0x15   : > { %p1290_p8 = por %p64_p5, %p63_p3  ;;  %p221_p10 = scmp.eq.s32.totalorder %s1529_s16, 1 }
  0x16   : > { %p1294_p9 = por %p215_p6, %p57_p1  ;;  %p943_p13 = scmp.lt.s32.totalorder %s1175_s14, 2 }
  0x17   : > { %s1301_s23 = scalar_select %p48_p7, %s1163_s11, %s50_s18  }
  0x18   : > { %s1541_s22 = scalar_select %p1294_p9, 1, 0 }
  0x19   : > { %p1303_p11 = por %p221_p10, %p63_p3  ;;  %s315_s25 = sand.u32 1, %s1163_s11  }
  0x1a   : > { %s857_s26 = sshll.u32 %s315_s25, 4  ;;  %s878_s27 = sshll.u32 %s1171_s13, 8 }
  0x1b   : > { %s1542_s24 = scalar_select %p1303_p11, 1, 0 }
  0x1c   : > { %s1543_s0 = sld [smem:[#allocation14_spill]]  ;;  %s319_s18 = scalar_lea.vmem [#allocation2], %s857_s26 }
  0x1d   : > { %s327_s16 = sshll.u32 %s319_s18, 4  ;;  %p1320_p0 = pnand %p943_p13, %p1282_p4  ;;  %s1316_s16 = int_to_ptr.vmem [resolvable:$true] %s327_s16 }
  0x1e   : > { %s1325_s13 = scalar_lea.sflag [#allocation3], %s315_s25 }
  0x1f   : > { %p1005_p3 = pneg %p1320_p0 }
  0x22   : > { %s1314_s20 = scalar_lea.hbm %s1543_s0, %s878_s27  ;;  %s1008_s19 = scalar_lea.hbm %s1543_s0, 512 }
  0x23   : > { %s1003_s27 = scalar_lea.hbm %s1314_s20, 256  ;;  %p1009_p4 = scmp.lt.u32.totalorder %s1314_s20, %s1543_s0 }
  0x24   : > { %p1004_p2 = scmp.ne.s32.totalorder %s1314_s20, %s1003_s27  ;;  %p1010_p7 = scmp.lt.u32.totalorder %s1008_s19, %s1003_s27 }
  0x25   : > { %p1012_p13 = scmp.lt.u32.totalorder %s1003_s27, %s1314_s20 }
  0x26   : > { %p1006_p5 = pnand %p1005_p3, %p1004_p2  ;;  %p1011_p10 = por %p1010_p7, %p1009_p4 }
  0x28   : > { %p1007_p6 = pneg %p1006_p5  ;;  %p1013_p12 = por %p1012_p13, %p1011_p10 }
  0x2a   : > { %p1014_p1 = pnand %p1013_p12, %p1007_p6 }
  0x2c   : > { %1017 = shalt.err (!%p1014_p1)
}
  0x2d   : > { %s1018_s25 = scalar_lea.vmem %s1316_s16, 256  ;;  %s1177_s26 = smov [#allocation2]  }
  0x2e   : > { %p1019_p2 = scmp.ne.s32.totalorder %s1316_s16, %s1018_s25  ;;  %s1023_s28 = sshll.u32 %s1177_s26, 4  ;;  %s1024_s28 = int_to_ptr.vmem [resolvable:$false] %s1023_s28 }
  0x2f   : > { %s1025_s29 = scalar_lea.vmem %s1024_s28, 512  ;;  %p1026_p9 = scmp.lt.s32.totalorder %s1316_s16, %s1024_s28 }
  0x30   : > { %p1021_p5 = pnand %p1019_p2, %p1005_p3  ;;  %p1027_p4 = scmp.lt.s32.totalorder %s1025_s29, %s1018_s25 }
  0x32   : > { %p1022_p11 = pneg %p1021_p5  ;;  %p1028_p7 = por %p1027_p4, %p1026_p9 }
  0x34   : > { %p1029_p10 = pnand %p1028_p7, %p1022_p11 }
  0x36   : > { %1032 = shalt.err (!%p1029_p10)
}
  0x37   : > { %s1178_s27 = smov 128   ;;  %s1179_s19 = smov 8  }
  0x38   : > { %932 = dma.hbm_to_vmem [thread:$0]  (!%p1320_p0), %s1314_s20, 256, %s1316_s16, %s1325_s13, %s1178_s27, %s1178_s27, %s1179_s19  }
  0x39   : > { %p335_p12 = scmp.lt.s32.totalorder %s1175_s14, 3  ;;  %p1545_p1 = scmp.ge.s32.totalorder %s1175_s14, 1 }
  0x3b   : > { %p336_p3 = pnand %p1545_p1, %p335_p12 }
  0x3c   : > { %s1357_s18 = sand.u32 (!%p336_p3), 1, %s1159_s10  }
  0x3d   : > { %339 = sbr.rel (%p336_p3) target bundleno = 358 (0x166), region = 48  ;;  %s861_s25 = sshll.u32 (!%p336_p3), %s1357_s18, 4 }
  0x3e   : > { %s342_s26 = scalar_lea.sflag (!%p336_p3), [#allocation3], %s1357_s18  ;;  %s345_s28 = scalar_lea.vmem (!%p336_p3), [#allocation2], %s861_s25 }
  0x44   : > { %1142 = dma.done.wait (%p1290_p8), %s342_s26, 256  }
  0x45   : > { %1144 = vsyncadd (%p1290_p8), %s342_s26, 4294967040  ;;  %v1180_v0 = vmov 0.0|0.0   ;;  %vm1181_vm0 = vmmov 0   ;;  %v1182_v1 = vmov 0.0   ;;  %v1183_v2 = vmov 0   ;;  %v390_v3 = vld [vmem:[%s345_s28] sm:$0xff] }
  0x46   : > { %911 = vmatprep.subr.bf16.mxu0 %v1180_v0  ;;  %914 = vmatprep.subr.bf16.mxu1 %v1180_v0  ;;  %v391_v4 = vld [vmem:[%s345_s28 + $0x8] sm:$0xff]  ;;  %v474_v6 = vld [vmem:[%s1523_s4] sm:$0x3]  ;;  %s1546_s1 = sld [smem:[#allocation15_spill]]  ;;  %vm399_vm1 = vcmask 130048   ;;  %s1547_s3 = sld [smem:[#allocation17_spill]] }
  0x47   : > { %894 = vmatprep.mubr.msk.f32.mxu0 %vm1181_vm0, %v1182_v1  ;;  %901 = vmatprep.mubr.msk.f32.mxu1 %vm1181_vm0, %v1182_v1  ;;  %v912_v5 = vpack.c.bf16 %v391_v4, %v390_v3  ;;  %v555_v7 = vld [vmem:[%s1525_s6] sm:$0xff]  ;;  %s1548_s2 = sld [smem:[#allocation16_spill]]  ;;  %v556_v12 = vld [vmem:[%s1525_s6 + $0x8] sm:$0xff]  ;;  %s862_s27 = sshll.u32 %s1357_s18, 1 }
  0x48   : > { %1001 = vset.pattern.permute.xlu0 %v1183_v2  ;;  %1002 = vset.pattern.permute.xlu1 %v1183_v2  ;;  %v553_v10 = vld [vmem:[%s1524_s5] sm:$0xff]  ;;  %v554_v13 = vld [vmem:[%s1524_s5 + $0x8] sm:$0xff]  ;;  %s657_s19 = sand.u32 1, %s1270_s15   ;;  %s872_s26 = sshll.u32 %s1167_s12, 5 }
  0x49   : > { %913 = vmatpush3.bf16.msra.mxu0 %v912_v5  ;;  %916 = vmatpush3.bf16.msra.mxu1 %v912_v5  ;;  %s1398_s28 = scalar_lea.vmem [#allocation8], %s861_s25  ;;  %s382_s16 = scalar_lea.vmem [#allocation6], %s862_s27 }
  0x4a   : > { %918 = vmatprep.subr.bf16.mxu0 %v912_v5  ;;  %477 = vperm.xlu0 %1001, %v474_v6   ;;  %s705_s13 = sshll.u32 %s1398_s28, 4  ;;  %s691_s17 = sshll.u32 %s382_s16, 4  ;;  %s1407_s17 = int_to_ptr.vmem [resolvable:$true] %s691_s17  ;;  %s1416_s13 = int_to_ptr.vmem [resolvable:$true] %s705_s13 }
  0x4b   : > { %559 = vperm.xlu1 %1002, %v555_v7   ;;  %s375_s21 = scalar_lea.vmem [#allocation5], %s862_s27  ;;  %s879_s15 = sshll.u32 %s1167_s12, 8 }
  0x4c   : > { %v392_v8 = vld [vmem:[%s1546_s1] sm:$0x3]  ;;  %s677_s20 = sshll.u32 %s375_s21, 4  ;;  %s1404_s1 = scalar_lea.hbm %s1527_s8, %s872_s26  ;;  %s1414_s20 = int_to_ptr.vmem [resolvable:$true] %s677_s20 }
  0x4d   : > { %v473_v9 = vld [vmem:[%s1547_s3] sm:$0x3]  ;;  %895 = vmatmul.mubr.msk.f32.vlgmr.msra.gmra.mrb[0].mxu0 %vm399_vm1, %v392_v8  ;;  %s1412_s27 = scalar_lea.hbm %s1526_s7, %s872_s26  ;;  %s1421_s29 = scalar_lea.hbm %s1528_s9, %s879_s15 }
  0x4e   : > { %v393_v11 = vld [vmem:[%s1548_s2] sm:$0x3]  ;;  %902 = vmatmul.mubr.msk.f32.vlgmr.msra.gmra.mrb[0].mxu1 %vm399_vm1, %v473_v9  ;;  %920 = vmatpush3.bf16.msra.mxu0 %v912_v5  ;;  %s1423_s3 = scalar_lea.sflag [#allocation7], %s657_s19  ;;  %s1033_s2 = scalar_lea.vmem %s1407_s17, 32 }
  0x4f   : > { %908 = vmatprep.mubr.msk.f32.mxu0 %vm399_vm1, %v553_v10  ;;  %396 = vperm.xlu0 %1001, %v393_v11   ;;  %p1034_p8 = scmp.ne.s32.totalorder %s1407_s17, %s1033_s2  ;;  %p1549_p9 = scmp.ne.s32.totalorder %s1541_s22, 0 }
  0x50   : > { %564 = vperm.xlu1 %1002, %v556_v12   ;;  %s1184_s26 = smov [#allocation6]  }
  0x51   : > { %909 = vmatmul.mubr.msk.f32.vlgmr.msra.gmra.mrb[2].mxu0 %vm399_vm1, %v554_v13  ;;  %p1035_p11 = pnand %p1034_p8, %p1549_p9  ;;  %s1037_s25 = sshll.u32 %s1184_s26, 4  ;;  %s1038_s25 = int_to_ptr.vmem [resolvable:$false] %s1037_s25 }
  0x52   : > { %p1040_p6 = scmp.lt.s32.totalorder %s1407_s17, %s1038_s25 }
  0x53   : > { %p1036_p0 = pneg %p1035_p11 }
  0xc9   : > { %v478_v14 = vpop.permute.xlu0 %477 }
  0xca   : > { %v1394_v15 = vpop.permute.xlu1 %559 }
  0xce   : > { %v397_v16 = vpop.permute.xlu0 %396 }
  0xcf   : > { %v565_v23 = vpop.permute.xlu1 %564 }
 0x120   : > { %v469_v17 = vpop.f32.mrb[0].mxu0 }
 0x121   : > { %v549_v18 = vpop.f32.mrb[0].mxu1  ;;  %v470_v19 = vadd.f32 %v469_v17, %v397_v16  ;;  %v896_v20 = vpop.f32.mrb[1].mxu0 }
 0x122   : > { %v550_v21 = vadd.f32 %v549_v18, %v478_v14  ;;  %v903_v22 = vpop.f32.mrb[1].mxu1 }
 0x123   : > { %648 = vst [vmem:[%s375_s21] sm:$0x3] %v470_v19 }
 0x124   : > { %649 = vst [vmem:[%s382_s16] sm:$0x3] %v550_v21  ;;  %v910_v24 = vpop.f32.mrb[2].mxu0  ;;  %s1039_s16 = scalar_lea.vmem %s1038_s25, 64 }
 0x125   : > { %p1041_p13 = scmp.lt.s32.totalorder %s1039_s16, %s1033_s2 }
 0x127   : > { %p1042_p2 = por %p1041_p13, %p1040_p6 }
 0x129   : > { %p1043_p5 = pnand %p1042_p2, %p1036_p0 }
 0x12b   : > { %1046 = shalt.err (!%p1043_p5)
}
 0x12c   : > { %s1047_s19 = scalar_lea.hbm %s1404_s1, 32  ;;  %s1051_s0 = scalar_lea.hbm %s1527_s8, 64 }
 0x12d   : > { %p1048_p4 = scmp.ne.s32.totalorder %s1404_s1, %s1047_s19  ;;  %p1052_p12 = scmp.lt.u32.totalorder %s1404_s1, %s1527_s8 }
 0x12e   : > { %p1053_p1 = scmp.lt.u32.totalorder %s1051_s0, %s1047_s19  ;;  %p1055_p8 = scmp.lt.u32.totalorder %s1047_s19, %s1404_s1 }
 0x12f   : > { %p1049_p7 = pnand %p1048_p4, %p1549_p9 }
 0x130   : > { %p1054_p3 = por %p1053_p1, %p1052_p12 }
 0x131   : > { %p1050_p10 = pneg %p1049_p7 }
 0x132   : > { %p1056_p11 = por %p1055_p8, %p1054_p3 }
 0x134   : > { %p1057_p0 = pnand %p1056_p11, %p1050_p10 }
 0x136   : > { %1060 = shalt.err (!%p1057_p0)
}
 0x137   : > { %924 = dma.vmem_to_hbm [thread:$0]  (%p1549_p9), %s1407_s17, 32, %s1404_s1, %s1423_s3   ;;  %v645_v25 = vadd.f32 %v910_v24, %v565_v23  ;;  %v639_v26 = vpop.f32.mrb[3].mxu0 }
 0x138   : > { %s653_s2 = scalar_lea.sflag [#allocation4], %s1357_s18  ;;  %s1061_s25 = scalar_lea.vmem %s1414_s20, 32 }
 0x139   : > { %p1062_p6 = scmp.ne.s32.totalorder %s1414_s20, %s1061_s25  ;;  %s1185_s16 = smov [#allocation5]  }
 0x13a   : > { %s1065_s19 = sshll.u32 %s1185_s16, 4  ;;  %s1066_s19 = int_to_ptr.vmem [resolvable:$false] %s1065_s19 }
 0x13b   : > { %p1063_p13 = pnand %p1062_p6, %p1549_p9  ;;  %s1067_s21 = scalar_lea.vmem %s1066_s19, 64 }
 0x13c   : > { %p1068_p5 = scmp.lt.s32.totalorder %s1414_s20, %s1066_s19  ;;  %p1069_p4 = scmp.lt.s32.totalorder %s1067_s21, %s1061_s25 }
 0x13d   : > { %p1064_p2 = pneg %p1063_p13 }
 0x13e   : > { %p1070_p7 = por %p1069_p4, %p1068_p5 }
 0x140   : > { %p1071_p10 = pnand %p1070_p7, %p1064_p2 }
 0x142   : > { %1074 = shalt.err (!%p1071_p10)
}
 0x143   : > { %s1075_s1 = scalar_lea.hbm %s1412_s27, 32  ;;  %s1079_s15 = scalar_lea.hbm %s1526_s7, 64 }
 0x144   : > { %p1076_p12 = scmp.ne.s32.totalorder %s1412_s27, %s1075_s1  ;;  %p1080_p8 = scmp.lt.u32.totalorder %s1412_s27, %s1526_s7 }
 0x145   : > { %p1081_p11 = scmp.lt.u32.totalorder %s1079_s15, %s1075_s1  ;;  %p1083_p6 = scmp.lt.u32.totalorder %s1075_s1, %s1412_s27 }
 0x146   : > { %p1077_p1 = pnand %p1076_p12, %p1549_p9 }
 0x147   : > { %p1082_p0 = por %p1081_p11, %p1080_p8 }
 0x148   : > { %p1078_p3 = pneg %p1077_p1 }
 0x149   : > { %p1084_p13 = por %p1083_p6, %p1082_p0 }
 0x14b   : > { %p1085_p2 = pnand %p1084_p13, %p1078_p3 }
 0x14d   : > { %1088 = shalt.err (!%p1085_p2)
}
 0x14e   : > { %923 = dma.vmem_to_hbm [thread:$0]  (%p1549_p9), %s1414_s20, 32, %s1412_s27, %s653_s2   ;;  %v640_v27 = vadd.f32 %v639_v26, %v1394_v15  ;;  %651 = vst [vmem:[%s1398_s28 + $0x8] sm:$0xff] %v645_v25 }
 0x14f   : > { %s1089_s26 = scalar_lea.vmem %s1416_s13, 256  ;;  %s1186_s25 = smov [#allocation8]  }
 0x150   : > { %650 = vst [vmem:[%s1398_s28] sm:$0xff] %v640_v27  ;;  %p1090_p5 = scmp.ne.s32.totalorder %s1416_s13, %s1089_s26  ;;  %s1093_s16 = sshll.u32 %s1186_s25, 4  ;;  %s1094_s16 = int_to_ptr.vmem [resolvable:$false] %s1093_s16 }
 0x151   : > { %s1095_s19 = scalar_lea.vmem %s1094_s16, 512  ;;  %p1096_p10 = scmp.lt.s32.totalorder %s1416_s13, %s1094_s16 }
 0x152   : > { %p1091_p4 = pnand %p1090_p5, %p1549_p9  ;;  %p1097_p12 = scmp.lt.s32.totalorder %s1095_s19, %s1089_s26 }
 0x154   : > { %p1092_p7 = pneg %p1091_p4  ;;  %p1098_p1 = por %p1097_p12, %p1096_p10 }
 0x156   : > { %p1099_p3 = pnand %p1098_p1, %p1092_p7 }
 0x158   : > { %1102 = shalt.err (!%p1099_p3)
}
 0x159   : > { %s1103_s28 = scalar_lea.hbm %s1421_s29, 256  ;;  %s1107_s2 = scalar_lea.hbm %s1528_s9, 512 }
 0x15a   : > { %p1104_p8 = scmp.ne.s32.totalorder %s1421_s29, %s1103_s28  ;;  %p1108_p6 = scmp.lt.u32.totalorder %s1421_s29, %s1528_s9 }
 0x15b   : > { %p1109_p13 = scmp.lt.u32.totalorder %s1107_s2, %s1103_s28  ;;  %p1111_p5 = scmp.lt.u32.totalorder %s1103_s28, %s1421_s29 }
 0x15c   : > { %p1105_p11 = pnand %p1104_p8, %p1549_p9 }
 0x15d   : > { %p1110_p2 = por %p1109_p13, %p1108_p6 }
 0x15e   : > { %p1106_p0 = pneg %p1105_p11 }
 0x15f   : > { %p1112_p4 = por %p1111_p5, %p1110_p2 }
 0x161   : > { %p1113_p7 = pnand %p1112_p4, %p1106_p0 }
 0x163   : > { %1116 = shalt.err (!%p1113_p7)
}
 0x164   : > { %s1187_s18 = smov 128   ;;  %s1188_s17 = smov 8  }
 0x165   : > { %925 = dma.vmem_to_hbm [thread:$0]  (%p1549_p9), %s1416_s13, 256, %s1421_s29, %s1423_s3, %s1187_s18, %s1187_s18, %s1188_s17  }
 0x166 PF: > { %s720_s15 = sand.u32 1, %s1155_s30   ;;  %p1550_p10 = scmp.ne.s32.totalorder %s1542_s24, 0 }
 0x167   : > { %p1551_p12 = scmp.ge.s32.totalorder %s1175_s14, 2  ;;  %s721_s0 = scalar_lea.sflag [#allocation4], %s720_s15 }
 0x169   : > { %p934_p1 = pnand %p1551_p12, %p1550_p10 }
 0x16b   : > { %1146 = dma.done.wait (!%p934_p1), %s721_s0, 32  }
 0x16c   : > { %1148 = vsyncadd (!%p934_p1), %s721_s0, 4294967264  ;;  %s1552_s12 = sadd.s32 4294967294, %s1175_s14  }
 0x16d   : > { %s729_s26 = sand.u32 1, %s1552_s12  }
 0x16e   : > { %s730_s25 = scalar_lea.sflag [#allocation7], %s729_s26 }
 0x16f   : > { %1150 = dma.done.wait (!%p934_p1), %s730_s25, 288  }
 0x170   : > { %1152 = vsyncadd (!%p934_p1), %s730_s25, 4294967008  ;;  %s29_s14 = sadd.s32 1, %s1175_s14   ;;  %s1553_s12 = sld [smem:[#allocation12_spill]] }
 0x171   : > { %p26_p9 = scmp.ge.s32.totalorder %s29_s14, 4   ;;  %s1554_s13 = sld [smem:[#allocation13_spill]] }
 0x172   : > { %s1555_s30 = smov %s1159_s10  ;;  %s1556_s10 = smov %s1163_s11 }
 0x173   : > { %s1557_s11 = smov %s1301_s23  ;;  %28 = sbr.rel (!%p26_p9) target bundleno = 13 (0xd), region = 125 }
 0x17a   :  { %744 = vsyncpa [#allocation3], 1 }
 0x17b   :  { %746 = vsyncpa [#allocation3 + $0x1], 1 }
 0x17c   :  { %747 = vsyncpa [#allocation4], 1 }
 0x17d   :  { %749 = vsyncpa [#allocation4 + $0x1], 1 }
 0x17e   :  { %750 = vsyncpa [#allocation7], 1 }
 0x17f   :  { %752 = vsyncpa [#allocation7 + $0x1], 1 }

</bundles_post_ra>
